<compile_context>
chip_gen: v7x
topology: tpu7x:2x2x1
jax: 0.10.0
libtpu: 0.0.40
codegen_flags: <defaults>
</compile_context>

<pallas_src>
import functools

import jax
import jax.numpy as jnp
from jax import lax
from jax.experimental import pallas as pl
from jax.experimental.pallas import tpu as pltpu

_LANES = 128                  # vreg lane width
_SUBLANES = 8                 # vreg sublane count (f32)
_MAX_TILE_ROWS = 2048         # 2048x128 f32 tile = 1 MiB
_NUM_SPLITS = 2               # leading 'parallel' grid axis (dual-TC on v7x)
_SMALL_PATH_MAX_ELEMS = 4096  # per-tensor element cap for the no-grid path


def _round_up(x, m):
    return ((x + m - 1) // m) * m


# ---------------------------------------------------------------------------
# Small path: no grid, full-array VMEM blocks, one fused weighted reduction.
# ---------------------------------------------------------------------------
def _pose_loss_small_kernel(pt_ref, pq_ref, gtt_ref, gtq_ref, out_ref, *,
                            w_t, w_q):
    dt = jnp.abs(pt_ref[...].astype(jnp.float32) - gtt_ref[...].astype(jnp.float32))
    dq = jnp.abs(pq_ref[...].astype(jnp.float32) - gtq_ref[...].astype(jnp.float32))
    out_ref[0, 0] = jnp.float32(w_t) * jnp.sum(dt) + jnp.float32(w_q) * jnp.sum(dq)


def _pose_loss_small(pred_t, pred_q, gt_t, gt_q, w_t, w_q):
    kernel = functools.partial(_pose_loss_small_kernel, w_t=w_t, w_q=w_q)
    out = pl.pallas_call(
        kernel,
        out_shape=jax.ShapeDtypeStruct((1, 1), jnp.float32),
        out_specs=pl.BlockSpec(memory_space=pltpu.SMEM),
    )(pred_t, pred_q, gt_t, gt_q)
    return out[0, 0]


# ---------------------------------------------------------------------------
# Large path: lane-dense streaming reduction with per-split VMEM accumulators.
# ---------------------------------------------------------------------------
def _pose_loss_slab_kernel(pred_ref, gt_ref, acc_ref, *, n_t, w_t, w_q,
                           tile_rows, tiles_per_split):
    c = pl.program_id(0)        # parallel split (per-TC partial accumulator)
    i = pl.program_id(1)        # sequential tiles within this split

    @pl.when(i == 0)
    def _():
        acc_ref[...] = jnp.zeros_like(acc_ref)

    diff = jnp.abs(pred_ref[...] - gt_ref[...])          # (tile_rows, 128), VPU

    # Global flattened element index of each lane; scalar base hoisted.
    base = (c * tiles_per_split + i) * (tile_rows * _LANES)
    idx = (base
           + lax.broadcasted_iota(jnp.int32, (tile_rows, _LANES), 0) * _LANES
           + lax.broadcasted_iota(jnp.int32, (tile_rows, _LANES), 1))

    # Translation elements weigh 1/(3B); quaternion AND padding weigh 3/(4B).
    # Padding has diff == 0 so it contributes nothing -> single select.
    w = jnp.where(idx < n_t, jnp.float32(w_t), jnp.float32(w_q))

    # Pure-VPU accumulation: fold (tile_rows,128) into the resident (8,128)
    # block via sublane-group adds (no XLU, no scalar path).
    contrib = (diff * w).reshape(tile_rows // _SUBLANES, _SUBLANES, _LANES)
    acc_ref[...] += jnp.sum(contrib, axis=0)


def _pose_loss_large(pred_t, pred_q, gt_t, gt_q, n_t, n_valid, w_t, w_q):
    rows = pl.cdiv(n_valid, _LANES)
    rows_per_split = pl.cdiv(rows, _NUM_SPLITS)
    tile_rows = min(_round_up(rows_per_split, _SUBLANES), _MAX_TILE_ROWS)
    tiles_per_split = pl.cdiv(rows_per_split, tile_rows)
    rows_pad = _NUM_SPLITS * tiles_per_split * tile_rows
    total = rows_pad * _LANES

    pred = jnp.concatenate(
        [pred_t.reshape(-1), pred_q.reshape(-1)]).astype(jnp.float32)
    gt = jnp.concatenate(
        [gt_t.reshape(-1), gt_q.reshape(-1)]).astype(jnp.float32)
    pred = jnp.pad(pred, (0, total - n_valid)).reshape(rows_pad, _LANES)
    gt = jnp.pad(gt, (0, total - n_valid)).reshape(rows_pad, _LANES)

    kernel = functools.partial(
        _pose_loss_slab_kernel, n_t=n_t, w_t=w_t, w_q=w_q,
        tile_rows=tile_rows, tiles_per_split=tiles_per_split)

    in_map = lambda c, i: (c * tiles_per_split + i, 0)
    partials = pl.pallas_call(
        kernel,
        out_shape=jax.ShapeDtypeStruct((_NUM_SPLITS, _SUBLANES, _LANES),
                                       jnp.float32),
        grid=(_NUM_SPLITS, tiles_per_split),
        in_specs=[pl.BlockSpec((tile_rows, _LANES), in_map),
                  pl.BlockSpec((tile_rows, _LANES), in_map)],
        out_specs=pl.BlockSpec((None, _SUBLANES, _LANES),
                               lambda c, i: (c, 0, 0)),
        compiler_params=pltpu.CompilerParams(
            dimension_semantics=("parallel", "arbitrary")),
    )(pred, gt)
    # Tiny (2,8,128) final reduce stays in XLA.
    return jnp.sum(partials)


# ---------------------------------------------------------------------------
# Public entry point (CriterionPose.forward equivalent).
# ---------------------------------------------------------------------------
def criterion_pose(pred_t, pred_q, gt_t, gt_q):
    """Pallas implementation of CriterionPose.forward. Returns a scalar f32."""
    n_t = int(pred_t.size)      # true element count for the t-mean
    n_q = int(pred_q.size)      # true element count for the q-mean
    n_valid = n_t + n_q
    w_t = 1.0 / float(n_t)      # 1 * L1Loss('mean') over n_t elements
    w_q = 3.0 / float(n_q)      # 3 * L1Loss('mean') over n_q elements

    if max(n_t, n_q) <= _SMALL_PATH_MAX_ELEMS:
        return _pose_loss_small(pred_t, pred_q, gt_t, gt_q, w_t, w_q)
    return _pose_loss_large(pred_t, pred_q, gt_t, gt_q, n_t, n_valid, w_t, w_q)


if __name__ == "__main__":
    key = jax.random.PRNGKey(0)
    k1, k2, k3, k4, k5, k6, k7, k8 = jax.random.split(key, 8)

    def ref_loss(pt, pq, gt, gq):
        return (1.0 * jnp.mean(jnp.abs(pt - gt))
                + 3.0 * jnp.mean(jnp.abs(pq - gq)))

    # Production-like small batch -> no-grid, full-array VMEM path.
    B = 8
    pred_t = jax.random.normal(k1, (B, 3), dtype=jnp.float32)
    pred_q = jax.random.normal(k2, (B, 4), dtype=jnp.float32)
    gt_t = jax.random.normal(k3, (B, 3), dtype=jnp.float32)
    gt_q = jax.random.normal(k4, (B, 4), dtype=jnp.float32)
    loss_small = jax.block_until_ready(criterion_pose(pred_t, pred_q, gt_t, gt_q))
    ref_small = ref_loss(pred_t, pred_q, gt_t, gt_q)
    assert jnp.allclose(loss_small, ref_small, rtol=1e-5, atol=1e-6), (
        loss_small, ref_small)

    # Large batch -> gridded lane-dense streaming path.
    B2 = 2000
    pred_t2 = jax.random.normal(k5, (B2, 3), dtype=jnp.float32)
    pred_q2 = jax.random.normal(k6, (B2, 4), dtype=jnp.float32)
    gt_t2 = jax.random.normal(k7, (B2, 3), dtype=jnp.float32)
    gt_q2 = jax.random.normal(k8, (B2, 4), dtype=jnp.float32)
    loss_large = jax.block_until_ready(
        criterion_pose(pred_t2, pred_q2, gt_t2, gt_q2))
    ref_large = ref_loss(pred_t2, pred_q2, gt_t2, gt_q2)
    assert jnp.allclose(loss_large, ref_large, rtol=1e-4, atol=1e-5), (
        loss_large, ref_large)

    print("KERNEL_OK")
</pallas_src>

<mosaic_0001>
module attributes {stable_mosaic.version = 11 : i64} {
  func.func @_pose_loss_small_kernel(%arg0: memref<8x3xf32, #tpu.memory_space<vmem>>, %arg1: memref<8x4xf32, #tpu.memory_space<vmem>>, %arg2: memref<8x3xf32, #tpu.memory_space<vmem>>, %arg3: memref<8x4xf32, #tpu.memory_space<vmem>>, %arg4: memref<1x1xf32, #tpu.memory_space<smem>>) attributes {dimension_semantics = [], scalar_prefetch = 0 : i64, scratch_operands = 0 : i64, tpu.core_type = #tpu.core_type<tc>} {
    %c0 = arith.constant 0 : index
    %c0_0 = arith.constant 0 : index
    %0 = vector.load %arg0[%c0, %c0_0] : memref<8x3xf32, #tpu.memory_space<vmem>>, vector<8x3xf32>
    %c0_1 = arith.constant 0 : index
    %c0_2 = arith.constant 0 : index
    %1 = vector.load %arg2[%c0_1, %c0_2] : memref<8x3xf32, #tpu.memory_space<vmem>>, vector<8x3xf32>
    %2 = arith.subf %0, %1 : vector<8x3xf32>
    %3 = math.absf %2 : vector<8x3xf32>
    %c0_3 = arith.constant 0 : index
    %c0_4 = arith.constant 0 : index
    %4 = vector.load %arg1[%c0_3, %c0_4] : memref<8x4xf32, #tpu.memory_space<vmem>>, vector<8x4xf32>
    %c0_5 = arith.constant 0 : index
    %c0_6 = arith.constant 0 : index
    %5 = vector.load %arg3[%c0_5, %c0_6] : memref<8x4xf32, #tpu.memory_space<vmem>>, vector<8x4xf32>
    %6 = arith.subf %4, %5 : vector<8x4xf32>
    %7 = math.absf %6 : vector<8x4xf32>
    %8 = vector.shape_cast %3 : vector<8x3xf32> to vector<1x8x3xf32>
    %cst = arith.constant dense<0.000000e+00> : vector<1xf32>
    %9 = vector.multi_reduction <add>, %8, %cst [1, 2] : vector<1x8x3xf32> to vector<1xf32>
    %10 = vector.shape_cast %9 : vector<1xf32> to vector<1x1x1xf32>
    %11 = vector.extract %10[0, 0, 0] : f32 from vector<1x1x1xf32>
    %cst_7 = arith.constant 0.0416666679 : f32
    %12 = arith.mulf %cst_7, %11 : f32
    %13 = vector.shape_cast %7 : vector<8x4xf32> to vector<1x8x4xf32>
    %cst_8 = arith.constant dense<0.000000e+00> : vector<1xf32>
    %14 = vector.multi_reduction <add>, %13, %cst_8 [1, 2] : vector<1x8x4xf32> to vector<1xf32>
    %15 = vector.shape_cast %14 : vector<1xf32> to vector<1x1x1xf32>
    %16 = vector.extract %15[0, 0, 0] : f32 from vector<1x1x1xf32>
    %cst_9 = arith.constant 9.375000e-02 : f32
    %17 = arith.mulf %cst_9, %16 : f32
    %18 = arith.addf %12, %17 : f32
    %c0_10 = arith.constant 0 : index
    %c0_11 = arith.constant 0 : index
    %19 = memref.load %arg4[%c0_10, %c0_11] : memref<1x1xf32, #tpu.memory_space<smem>>
    memref.store %18, %arg4[%c0_10, %c0_11] : memref<1x1xf32, #tpu.memory_space<smem>>
    return
  }
}

</mosaic_0001>

<bundles_post_ra>
// kernel: tpu_custom_call.1
= control target key start
LH: loop header
LB: loop body
LE: loop exit
PB: predicated region body
PF: predicated region fallthrough
CT: control target
= control target key end

     0   :  { %s133_s0 = inlined_call_operand.vmem [shape: f32[8,3], index: 0, kind: input, shape index: {}]   ;;  %s134_s1 = inlined_call_operand.vmem [shape: f32[8,4], index: 1, kind: input, shape index: {}]   ;;  %s135_s2 = inlined_call_operand.vmem [shape: f32[8,3], index: 2, kind: input, shape index: {}]   ;;  %s136_s3 = inlined_call_operand.vmem [shape: f32[8,4], index: 3, kind: input, shape index: {}]   ;;  %s137_s4 = inlined_call_operand.hbm [shape: f32[1,1], index: 4, kind: output, shape index: {}]  }
   0x1   :  { %v18_v0 = vld [vmem:[%s133_s0] sm:$0xff] }
   0x2   :  { %v19_v1 = vld [vmem:[%s135_s2] sm:$0xff] }
   0x3   :  { %v22_v2 = vld [vmem:[%s134_s1] sm:$0xff]  ;;  %v20_v3 = vsub.f32 %v18_v0, %v19_v1 }
   0x4   :  { %v23_v4 = vld [vmem:[%s136_s3] sm:$0xff] }
   0x5   :  { %9 = vsyncpa [#allocation3], 0  ;;  %vm26_vm0 = vcmask 23552   ;;  %v24_v5 = vsub.f32 %v22_v2, %v23_v4  ;;  %v21_v6 = vand.u32 2147483647, %v20_v3  ;;  %vm38_vm1 = vcmask 31744  }
   0x6   :  { %s71_s26 = scalar_lea.hbm %s137_s4, 16 }
   0x7   :  { %v25_v7 = vand.u32 2147483647, %v24_v5  ;;  %v27_v8 = vsel %vm26_vm0, %v21_v6, 0.0  ;;  %p72_p0 = scmp.ne.s32.totalorder %s137_s4, %s71_s26  ;;  %p75_p1 = scmp.lt.u32.totalorder %s71_s26, %s137_s4 }
   0x8   :  { %28 = vadd.xlane.f32.xlu0 %v27_v8 }
   0x9   :  { %v39_v9 = vsel %vm38_vm1, %v25_v7, 0.0  ;;  %p77_p2 = pnand %p75_p1, %p72_p0 }
   0xc   :  { %40 = vadd.xlane.f32.xlu0 %v39_v9 }
  0x95   :  { %v29_v10 = vpop.xlane.xlu0 %28 }
  0x96   :  { %v30_v11 = vrot.slane %v29_v10, 4 }
  0x98   :  { %v31_v12 = vadd.f32 %v30_v11, %v29_v10 }
  0x99   :  { %v41_v13 = vpop.xlane.xlu0 %40 }
  0x9a   :  { %v32_v14 = vrot.slane %v31_v12, 2  ;;  %v42_v15 = vrot.slane %v41_v13, 4 }
  0x9c   :  { %v43_v16 = vadd.f32 %v42_v15, %v41_v13  ;;  %v33_v17 = vadd.f32 %v32_v14, %v31_v12 }
  0x9e   :  { %v44_v18 = vrot.slane %v43_v16, 2  ;;  %v34_v19 = vrot.slane %v33_v17, 1 }
  0xa0   :  { %v45_v20 = vadd.f32 %v44_v18, %v43_v16  ;;  %v35_v21 = vadd.f32 %v34_v19, %v33_v17 }
  0xa2   :  { %66 = vpush %v35_v21  ;;  %v46_v22 = vrot.slane %v45_v20, 1 }
  0xa4   :  { %v47_v23 = vadd.f32 %v46_v22, %v45_v20 }
  0xa6   :  { %68 = vpush %v47_v23 }
  0xd3   :  { %s67_s0 = spop %66 }
  0xd4   :  { %s37_s1 = smul.f32 0.041666668, %s67_s0 }
  0xd7   :  { %s69_s2 = spop %68 }
  0xd8   :  { %s49_s3 = smul.f32 0.09375, %s69_s2 }
  0xda   :  { %s50_s23 = sadd.f32 %s49_s3, %s37_s1 }
  0xdc   :  { %52 = sst [smem:[#allocation2]] %s50_s23 }
  0xdd   :  { %80 = shalt.err (!%p77_p2)
}
  0xde   :  { %s83_s5 = smov [#allocation2]  }
  0xdf   :  { %60 = dma.smem_to_hbm %s83_s5, 16, %s137_s4, [#allocation3]  }
  0xe0   :  { %81 = dma.done.wait [#allocation3], 16  }
  0xe1   :  { %82 = vsyncadd [#allocation3], 4294967280 }
  0xe2   :  { %64 = sfence }
  0xe3   :  { %65 = vsyncpa [#allocation3], 1 }

</bundles_post_ra>
